<compile_context>
chip_gen: v5e
topology: v5e:2x2
jax: 0.10.0
libtpu: 0.0.40
codegen_flags: <defaults>
</compile_context>

<pallas_src>
import functools

import jax
import jax.numpy as jnp
from jax.experimental import pallas as pl
from jax.experimental.pallas import tpu as pltpu


def _drop_path_kernel(scale_ref, x_ref, o_ref):
    # scale_ref: (tb, 1) f32 -- exactly 0.0 or 1/keep_prob per sample.
    # x_ref / o_ref: (tb, tn) in the input's native dtype.
    o_ref[...] = x_ref[...] * scale_ref[...].astype(o_ref.dtype)


def _pick_tiles(b, n_full):
    """Tile sizes for the [B, n_full] slab (n_full is a multiple of 128)."""
    # Row (sublane) tile: full batch if <= 8, otherwise a multiple of 8.
    if b <= 8:
        tb = b
    else:
        tb = min(b, 256)
        tb -= tb % 8
    # Column (lane) tile: multiple of 128, capped at 2048 (<= 2 MiB f32/block).
    tn = min(n_full, 2048)
    # Only force a column split when the row grid has a single step, so the
    # overall grid has >= 2 steps (pipeline overlap / both TCs on v7x) without
    # shrinking blocks when rows already provide parallel work.
    row_steps = pl.cdiv(b, tb)
    if row_steps == 1 and n_full // tn < 2 and n_full >= 256:
        tn = max(128, (n_full // 2) // 128 * 128)
    return tb, tn


@functools.partial(jax.jit,
                   static_argnames=("dropout_prob", "deterministic", "tb", "tn"))
def drop_path(x, seed, *, dropout_prob=0.0, deterministic=False, tb=None, tn=None):
    """DropPath forward. x: [B, ...]; seed: int32 scalar seeding the per-sample mask."""
    if deterministic:
        return x
    keep_prob = 1.0 - float(dropout_prob)
    if keep_prob <= 0.0:
        # Everything dropped (literal formula would give 0 * inf = NaN).
        return jnp.zeros_like(x)

    b = x.shape[0]
    n = 1
    for d in x.shape[1:]:
        n *= d
    n = max(n, 1)
    x2 = x.reshape(b, n)

    # Pad the feature dim to a multiple of 128 for lane-dense, unmasked stores.
    pad = (-n) % 128
    if pad:
        x2 = jnp.pad(x2, ((0, 0), (0, pad)))
    n_full = n + pad

    # Per-sample scale, computed once in plain JAX (tiny [B, 1] array).
    # u is an exact multiple of 2^-23 in [0, 1 - 2^-23], so keep_prob + u never
    # spuriously rounds up past the next integer at keep_prob == 1.0.
    bits = jax.random.bits(jax.random.PRNGKey(seed), (b, 1), dtype=jnp.uint32)
    u = jnp.right_shift(bits, jnp.uint32(9)).astype(jnp.float32)
    u = u * jnp.float32(1.0 / (1 << 23))
    scale = jnp.floor(jnp.float32(keep_prob) + u) * jnp.float32(1.0 / keep_prob)

    dtb, dtn = _pick_tiles(b, n_full)
    tb = dtb if tb is None else tb
    tn = dtn if tn is None else tn

    grid = (pl.cdiv(b, tb), pl.cdiv(n_full, tn))
    out = pl.pallas_call(
        _drop_path_kernel,
        out_shape=jax.ShapeDtypeStruct((b, n_full), x.dtype),
        grid_spec=pl.GridSpec(
            grid=grid,
            in_specs=[
                pl.BlockSpec((tb, 1), lambda i, j: (i, 0)),    # per-sample scale
                pl.BlockSpec((tb, tn), lambda i, j: (i, j)),   # input tile
            ],
            out_specs=pl.BlockSpec((tb, tn), lambda i, j: (i, j)),
        ),
        compiler_params=pltpu.CompilerParams(
            dimension_semantics=("parallel", "parallel")),
    )(scale, x2)

    if pad:
        out = out[:, :n]
    return out.reshape(x.shape)


if __name__ == "__main__":
    # Small shapes consistent with the module: per-sample mask over [B, C, H, W].
    batch, channels, height, width = 8, 4, 16, 16
    key = jax.random.PRNGKey(0)
    x = jax.random.normal(key, (batch, channels, height, width), jnp.float32)

    # 1) dropout_prob = 0.0 (module default): DropPath is an exact identity.
    out0 = drop_path(x, 0, dropout_prob=0.0, deterministic=False)
    jax.block_until_ready(out0)
    assert out0.shape == x.shape
    assert jnp.array_equal(out0, x), "p=0.0 must be identity"

    # 2) deterministic=True short-circuits to identity (as in torch).
    out_det = drop_path(x, 123, dropout_prob=0.5, deterministic=True)
    jax.block_until_ready(out_det)
    assert jnp.array_equal(out_det, x), "deterministic path must be identity"

    # 3) dropout_prob = 0.5: each sample is either fully dropped (all zeros) or
    #    scaled by exactly 1/keep_prob -- one clean decision per sample.
    keep_prob = 0.5
    out1 = drop_path(x, 42, dropout_prob=0.5, deterministic=False)
    jax.block_until_ready(out1)
    scaled = x / keep_prob
    for bidx in range(batch):
        is_zero = bool(jnp.allclose(out1[bidx], 0.0, atol=1e-6))
        is_scaled = bool(jnp.allclose(out1[bidx], scaled[bidx], atol=1e-5, rtol=1e-5))
        assert is_zero or is_scaled, f"sample {bidx}: not a clean keep/drop decision"

    # 4) dropout_prob = 1.0 drops everything (guarded; no NaN).
    out_all = drop_path(x, 7, dropout_prob=1.0, deterministic=False)
    jax.block_until_ready(out_all)
    assert jnp.array_equal(out_all, jnp.zeros_like(x)), "p=1.0 must drop all samples"

    # 5) Non-128-aligned feature dim goes through the padded lane-dense path.
    x_odd = jax.random.normal(jax.random.PRNGKey(1), (4, 3, 5, 7), jnp.float32)
    out_odd = drop_path(x_odd, 0, dropout_prob=0.0, deterministic=False)
    jax.block_until_ready(out_odd)
    assert out_odd.shape == x_odd.shape
    assert jnp.array_equal(out_odd, x_odd), "padded path must round-trip exactly at p=0"

    print("KERNEL_OK")
</pallas_src>

<mosaic_0001>
module attributes {stable_mosaic.version = 11 : i64} {
  func.func @_drop_path_kernel(%arg0: i32, %arg1: i32, %arg2: memref<8x1xf32, #tpu.memory_space<vmem>>, %arg3: memref<8x512xf32, #tpu.memory_space<vmem>>, %arg4: memref<8x512xf32, #tpu.memory_space<vmem>>) attributes {dimension_semantics = [#tpu.dimension_semantics<parallel>, #tpu.dimension_semantics<parallel>], iteration_bounds = array<i64: 1, 2>, scalar_prefetch = 0 : i64, scratch_operands = 0 : i64, tpu.core_type = #tpu.core_type<tc>, window_params = [{transform_indices = @transform_0, window_bounds = array<i64: 8, 1>}, {transform_indices = @transform_1, window_bounds = array<i64: 8, 512>}, {transform_indices = @transform_2, window_bounds = array<i64: 8, 512>}]} {
    %c0 = arith.constant 0 : index
    %c0_0 = arith.constant 0 : index
    %0 = vector.load %arg3[%c0, %c0_0] : memref<8x512xf32, #tpu.memory_space<vmem>>, vector<8x512xf32>
    %c0_1 = arith.constant 0 : index
    %c0_2 = arith.constant 0 : index
    %1 = vector.load %arg2[%c0_1, %c0_2] : memref<8x1xf32, #tpu.memory_space<vmem>>, vector<8x1xf32>
    %2 = vector.broadcast %1 : vector<8x1xf32> to vector<8x512xf32>
    %3 = arith.mulf %0, %2 : vector<8x512xf32>
    %c0_3 = arith.constant 0 : index
    %c0_4 = arith.constant 0 : index
    %4 = vector.load %arg4[%c0_3, %c0_4] : memref<8x512xf32, #tpu.memory_space<vmem>>, vector<8x512xf32>
    tpu.vector_store %arg4[%c0_3, %c0_4], %3 {strides = array<i32>} : memref<8x512xf32, #tpu.memory_space<vmem>>, vector<8x512xf32>,
    return
  }
  func.func @transform_0(%arg0: i32, %arg1: i32) -> (i32, i32) {
    %c0_i32 = arith.constant 0 : i32
    %c0_i32_0 = arith.constant 0 : i32
    return %arg0, %c0_i32 : i32, i32
  }
  func.func @transform_1(%arg0: i32, %arg1: i32) -> (i32, i32) {
    %c0_i32 = arith.constant 0 : i32
    return %arg0, %arg1 : i32, i32
  }
  func.func @transform_2(%arg0: i32, %arg1: i32) -> (i32, i32) {
    %c0_i32 = arith.constant 0 : i32
    return %arg0, %arg1 : i32, i32
  }
}

</mosaic_0001>

<bundles_post_ra>
// kernel: drop_path.1
= control target key start
LH: loop header
LB: loop body
LE: loop exit
PB: predicated region body
PF: predicated region fallthrough
CT: control target
= control target key end

     0   :  { %s398_s9 = smov 0   ;;  %s400_s10 = smov 0   ;;  %s434_s0 = inlined_call_operand.vmem [shape: f32[8,1], index: 0, kind: input, shape index: {}]   ;;  %s435_s1 = inlined_call_operand.vmem [shape: f32[8,1024], index: 1, kind: input, shape index: {}]   ;;  %s436_s2 = inlined_call_operand.vmem [shape: f32[8,1024], index: 2, kind: output, shape index: {}]  }
   0x1   :  { %s402_s11 = smov 0  }
   0x2 LB: > { %s21_s12 = sadd.s32 1, %s376_s10  ;;  %p325_p0 = scmp.ge.s32.totalorder %s380_s11, 1  ;;  %s380_s11 = sphi %s402_s11, %s12_s11   ;;  %s376_s10 = sphi %s400_s10, %s438_s10   ;;  %s372_s9 = sphi %s398_s9, %s437_s9  }
   0x3   : > { %p22_p1 = scmp.ge.s32.totalorder %s21_s12, 2  ;;  %p142_p2 = scmp.lt.s32.totalorder %s380_s11, 3 }
   0x5   : > { %s440_s12 = smov (%p22_p1, %s21_s12), 0  ;;  %p143_p3 = pnand %p325_p0, %p142_p2 }
   0x6   : > { %s326_s15 = sshll.u32 (!%p143_p3), %s372_s9, 2 }
   0x7   : > { %146 = sbr.rel (%p143_p3) target bundleno = 135 (0x87), region = 28  ;;  %p183_p4 = scmp.lt.s32.totalorder (!%p143_p3), %s326_s15, 7 }
   0xc   : > { %v204_v0 = vld [vmem:[%s434_s0] sm:$0xff]  ;;  %v382_v1 = vmov 0   ;;  %s442_s15 = smov (!%p183_p4, %s326_s15), 7 }
   0xd   : > { %357 = vset.pattern.permute.xlu0 %v382_v1  ;;  %s327_s16 = sshll.u32 %s442_s15, 3 }
   0xe   : > { %207 = vperm.xlu0 %357, %v204_v0   ;;  %s188_s19 = scalar_lea.vmem %s435_s1, %s327_s16  ;;  %s198_s22 = scalar_lea.vmem %s436_s2, %s327_s16 }
   0xf   : > { %v200_v2 = vld [vmem:[%s188_s19] sm:$0xff]  ;;  %v201_v3 = vld [vmem:[%s188_s19 + $0x8] sm:$0xff]  ;;  %v202_v5 = vld [vmem:[%s188_s19 + $0x10] sm:$0xff] }
  0x10   : > { %v203_v6 = vld [vmem:[%s188_s19 + $0x18] sm:$0xff] }
  0x80   : > { %v208_v4 = vpop.permute.xlu0 %207 }
  0x81   : > { %v210_v7 = vmul.f32 %v208_v4, %v200_v2  ;;  %v211_v8 = vmul.f32 %v208_v4, %v201_v3  ;;  %v212_v9 = vmul.f32 %v208_v4, %v202_v5  ;;  %v213_v10 = vmul.f32 %v208_v4, %v203_v6 }
  0x83   : > { %214 = vst [vmem:[%s198_s22] sm:$0xff] %v210_v7 }
  0x84   : > { %215 = vst [vmem:[%s198_s22 + $0x8] sm:$0xff] %v211_v8 }
  0x85   : > { %216 = vst [vmem:[%s198_s22 + $0x10] sm:$0xff] %v212_v9 }
  0x86   : > { %217 = vst [vmem:[%s198_s22 + $0x18] sm:$0xff] %v213_v10 }
  0x87 PF: > { %s12_s11 = sadd.s32 1, %s380_s11   ;;  %s437_s9 = smov %s376_s10 }
  0x88   : > { %p9_p5 = scmp.ge.s32.totalorder %s12_s11, 4   ;;  %s438_s10 = smov %s440_s12 }
  0x8a   :  { %11 = sbr.rel (!%p9_p5) target bundleno = 2 (0x2), region = 61 }

</bundles_post_ra>
